<compile_context>
chip_gen: v7x
topology: tpu7x:2x2x1
jax: 0.10.0
libtpu: 0.0.40
codegen_flags: <defaults>
</compile_context>

<pallas_src>
import functools

import jax
import jax.numpy as jnp
from jax.experimental import pallas as pl
from jax.experimental.pallas import tpu as pltpu


def _round_up(x, m):
    return (x + m - 1) // m * m


def _pick_v_tile(v, target):
    """Largest multiple of 128 that divides v and is <= target; else v (single tile)."""
    if v % 128 == 0:
        tv = max(128, (min(target, v) // 128) * 128)
        while v % tv:
            tv -= 128
        return tv
    return v


def _copygen_kernel(hidden_ref, wt_ref, b_ref, wc_ref, bc_ref,
                    out_ref, pcopy_ref,
                    m_scr, l_scr, pc_scr, *, nvt):
    """Fused projection + streaming softmax + copy gate.

    hidden_ref : [TM, D]  bf16 (resident across the vocab axis)
    wt_ref     : [D, TV]  bf16 (streamed vocab tile of W^T)
    b_ref      : [1, TV]  f32  (bias tile; PAD column already -inf)
    wc_ref     : [1, D]   f32
    bc_ref     : [1]      f32  (SMEM scalar)
    out_ref    : [TM, TV] f32  (columns of out_prob; written on the 2nd pass)
    pcopy_ref  : [TM, 1]  f32
    scratch    : running max / running sum-exp / p_copy, each [TM, 1] f32
    """
    s = pl.program_id(1)

    h = hidden_ref[...]                                           # [TM, D]
    # logits tile = hidden @ W^T[:, tile] + b[tile]  (MXU, f32 accumulate)
    logits = jnp.dot(h, wt_ref[...], preferred_element_type=jnp.float32)
    logits = logits + b_ref[...]                                  # [TM, TV]; PAD col = -inf

    @pl.when(s == 0)
    def _init():
        m_scr[...] = jnp.full_like(m_scr, -jnp.inf)
        l_scr[...] = jnp.zeros_like(l_scr)
        # p_copy = sigmoid(hidden @ Wc^T + bc) * 1e-4 as a VPU/XLU row reduction.
        z = jnp.sum(h.astype(jnp.float32) * wc_ref[...], axis=1, keepdims=True) + bc_ref[0]
        pc = jax.nn.sigmoid(z) * jnp.float32(1e-4)                # [TM, 1]
        pc_scr[...] = pc
        pcopy_ref[...] = pc

    @pl.when(s < nvt)                      # pass 1: online softmax statistics
    def _stats():
        m_prev = m_scr[...]
        m_new = jnp.maximum(m_prev, jnp.max(logits, axis=1, keepdims=True))
        l_scr[...] = (l_scr[...] * jnp.exp(m_prev - m_new)
                      + jnp.sum(jnp.exp(logits - m_new), axis=1, keepdims=True))
        m_scr[...] = m_new

    @pl.when(s >= nvt)                     # pass 2: normalize, gate, store
    def _write():
        inv_l = pl.reciprocal(l_scr[...], approx=False)
        prob = jnp.exp(logits - m_scr[...]) * inv_l
        out_ref[...] = (prob * (1.0 - pc_scr[...])).astype(out_ref.dtype)


def copy_generator_forward(hidden, attn, src_map, W, b, Wc, bc, pad_idx,
                           *, row_tile=256, v_tile=512):
    N, D = hidden.shape
    N2, slen = attn.shape
    slen2, batch, cvocab = src_map.shape
    assert N == N2 and slen == slen2 and N % batch == 0
    V = W.shape[0]
    tlen = N // batch

    # ---- one-time parameter prep (wrapper side) ---------------------------
    # Fold the PAD mask into the f32 bias: x + (-inf) = -inf before softmax.
    b_masked = jnp.asarray(b, jnp.float32).at[pad_idx].set(-jnp.inf).reshape(1, V)
    wt = jnp.asarray(W).T.astype(jnp.bfloat16)                    # [D, V], MXU dtype
    wc = jnp.asarray(Wc, jnp.float32).reshape(1, D)
    bc_s = jnp.asarray(bc, jnp.float32).reshape(1)
    h_bf = hidden.astype(jnp.bfloat16)

    # ---- tiling ------------------------------------------------------------
    TM = min(row_tile, _round_up(N, 8))        # row tile (multiple of 8)
    N_pad = _round_up(N, TM)
    if N_pad != N:
        h_bf = jnp.pad(h_bf, ((0, N_pad - N), (0, 0)))
    TV = _pick_v_tile(V, v_tile)               # vocab tile (mult. of 128 when possible)
    nvt = V // TV
    nrt = N_pad // TM

    out_prob_p, p_copy_p = pl.pallas_call(
        functools.partial(_copygen_kernel, nvt=nvt),
        grid=(nrt, 2 * nvt),
        in_specs=[
            pl.BlockSpec((TM, D), lambda i, s: (i, 0)),           # hidden, resident over s
            pl.BlockSpec((D, TV), lambda i, s: (0, s % nvt)),     # W^T vocab tiles (streamed twice)
            pl.BlockSpec((1, TV), lambda i, s: (0, s % nvt)),     # bias tiles (PAD = -inf)
            pl.BlockSpec((1, D), lambda i, s: (0, 0)),            # copy-gate weights
            pl.BlockSpec(memory_space=pltpu.MemorySpace.SMEM),    # bc scalar in SMEM
        ],
        out_specs=(
            # out_prob columns: block (i, 0) held through pass 1, filled in pass 2.
            pl.BlockSpec((TM, TV), lambda i, s: (i, jnp.maximum(s - nvt, 0))),
            pl.BlockSpec((TM, 1), lambda i, s: (i, 0)),
        ),
        out_shape=(jax.ShapeDtypeStruct((N_pad, V), jnp.float32),
                   jax.ShapeDtypeStruct((N_pad, 1), jnp.float32)),
        scratch_shapes=[pltpu.VMEM((TM, 1), jnp.float32),   # running max
                        pltpu.VMEM((TM, 1), jnp.float32),   # running sum-exp
                        pltpu.VMEM((TM, 1), jnp.float32)],  # p_copy
        compiler_params=pltpu.CompilerParams(
            dimension_semantics=("parallel", "arbitrary")),
    )(h_bf, wt, b_masked, wc, bc_s)

    out_prob = out_prob_p[:N]
    p_copy = p_copy_p[:N]

    # Copy distribution: p_copy * (attn @ src_map) batched over `batch`.
    # Left to XLA: it is negligible next to the projection and needs no
    # explicit transposes in this layout.
    unscaled = jnp.einsum('tbs,sbc->tbc', attn.reshape(tlen, batch, slen), src_map)
    copy_prob = unscaled.reshape(N, cvocab) * p_copy

    # TODO(synk): writing out_prob/copy_prob directly into one fused [N, V+cvocab]
    # buffer needs 128-aligned V/cvocab column blocks; kept as a concatenate here.
    return jnp.concatenate([out_prob, copy_prob], axis=1)


if __name__ == "__main__":
    # Small shapes, chosen so the test exercises both grid axes
    # (2 row tiles x 2 vocab tiles x 2 softmax passes).
    batch, tlen, slen = 2, 8, 8
    input_size, vocab, cvocab = 32, 256, 6
    pad_idx = 1  # TODO(synk): real module reads tgt_dict.stoi[PAD_WORD]; synthetic index here.
    N = tlen * batch

    key = jax.random.PRNGKey(0)
    k1, k2, k3, k4, k5, k6, k7 = jax.random.split(key, 7)

    hidden = jax.random.normal(k1, (N, input_size), jnp.float32)
    attn_raw = jax.random.uniform(k2, (N, slen), jnp.float32) + 1e-3
    attn = attn_raw / jnp.sum(attn_raw, axis=1, keepdims=True)
    src_idx = jax.random.randint(k3, (slen, batch), 0, cvocab)
    src_map = jax.nn.one_hot(src_idx, cvocab, dtype=jnp.float32)   # [slen, batch, cvocab]

    W = jax.random.normal(k4, (vocab, input_size), jnp.float32) * 0.1
    b = jax.random.normal(k5, (vocab,), jnp.float32) * 0.1
    Wc = jax.random.normal(k6, (1, input_size), jnp.float32) * 0.1
    bc = jax.random.normal(k7, (1,), jnp.float32) * 0.1

    out = copy_generator_forward(hidden, attn, src_map, W, b, Wc, bc, pad_idx,
                                 row_tile=8, v_tile=128)
    out = jax.block_until_ready(out)
    assert out.shape == (N, vocab + cvocab)

    # Pure-JAX reference (same math as the PyTorch forward; hidden/W rounded to
    # bf16 to mirror the kernel's MXU input dtype).
    h_q = hidden.astype(jnp.bfloat16).astype(jnp.float32)
    w_q = W.astype(jnp.bfloat16).astype(jnp.float32)
    logits = h_q @ w_q.T + b
    logits = logits.at[:, pad_idx].set(-jnp.inf)
    prob = jax.nn.softmax(logits, axis=1)
    p_copy_ref = jax.nn.sigmoid(h_q @ Wc.T + bc) * 1e-4
    out_prob_ref = prob * (1.0 - p_copy_ref)
    mul_attn = attn * p_copy_ref
    cp_ref = jnp.einsum('tbs,sbc->tbc', mul_attn.reshape(tlen, batch, slen),
                        src_map).reshape(N, cvocab)
    ref = jnp.concatenate([out_prob_ref, cp_ref], axis=1)

    assert jnp.allclose(out, ref, atol=2e-5, rtol=1e-4), (
        "mismatch vs reference: max abs diff = %e"
        % float(jnp.max(jnp.abs(out - ref))))

    print("KERNEL_OK")
</pallas_src>

<mosaic_0001>
module attributes {stable_mosaic.version = 11 : i64} {
  func.func @_copygen_kernel(%arg0: i32, %arg1: i32, %arg2: memref<8x32xbf16, #tpu.memory_space<vmem>>, %arg3: memref<32x128xbf16, #tpu.memory_space<vmem>>, %arg4: memref<1x128xf32, #tpu.memory_space<vmem>>, %arg5: memref<1x32xf32, #tpu.memory_space<vmem>>, %arg6: memref<1xf32, #tpu.memory_space<smem>>, %arg7: memref<8x128xf32, #tpu.memory_space<vmem>>, %arg8: memref<8x1xf32, #tpu.memory_space<vmem>>, %arg9: memref<8x1xf32, #tpu.memory_space<vmem>>, %arg10: memref<8x1xf32, #tpu.memory_space<vmem>>, %arg11: memref<8x1xf32, #tpu.memory_space<vmem>>) attributes {dimension_semantics = [#tpu.dimension_semantics<parallel>, #tpu.dimension_semantics<arbitrary>], iteration_bounds = array<i64: 2, 4>, scalar_prefetch = 0 : i64, scratch_operands = 3 : i64, tpu.core_type = #tpu.core_type<tc>, window_params = [{transform_indices = @transform_0, window_bounds = array<i64: 8, 32>}, {transform_indices = @transform_1, window_bounds = array<i64: 32, 128>}, {transform_indices = @transform_2, window_bounds = array<i64: 1, 128>}, {pipeline_mode = #tpu.pipeline_mode<synchronous>, transform_indices = @transform_3, window_bounds = array<i64: 1, 32>}, {transform_indices = @transform_4, window_bounds = array<i64: 1>}, {transform_indices = @transform_5, window_bounds = array<i64: 8, 128>}, {transform_indices = @transform_6, window_bounds = array<i64: 8, 1>}]} {
    %c0 = arith.constant 0 : index
    %c0_0 = arith.constant 0 : index
    %0 = vector.load %arg2[%c0, %c0_0] : memref<8x32xbf16, #tpu.memory_space<vmem>>, vector<8x32xbf16>
    %c0_1 = arith.constant 0 : index
    %c0_2 = arith.constant 0 : index
    %1 = vector.load %arg3[%c0_1, %c0_2] : memref<32x128xbf16, #tpu.memory_space<vmem>>, vector<32x128xbf16>
    %cst = arith.constant dense<0.000000e+00> : vector<8x128xf32>
    %2 = tpu.matmul %0, %1, %cst {dimension_numbers = #tpu.dot_dimension_numbers<[1], [0], [0], [1], [0, 0, 1, 1], [], []>} : vector<8x32xbf16>, vector<32x128xbf16>, vector<8x128xf32> -> vector<8x128xf32>
    %c0_3 = arith.constant 0 : index
    %c0_4 = arith.constant 0 : index
    %3 = vector.load %arg4[%c0_3, %c0_4] : memref<1x128xf32, #tpu.memory_space<vmem>>, vector<1x128xf32>
    %4 = vector.broadcast %3 : vector<1x128xf32> to vector<8x128xf32>
    %5 = arith.addf %2, %4 : vector<8x128xf32>
    %c0_i32 = arith.constant 0 : i32
    %6 = arith.cmpi eq, %arg1, %c0_i32 : i32
    %7 = arith.extui %6 : i1 to i32
    %c0_i32_5 = arith.constant 0 : i32
    %8 = arith.cmpi ne, %7, %c0_i32_5 : i32
    scf.if %8 {
      %cst_9 = arith.constant 0xFF800000 : f32
      %15 = vector.broadcast %cst_9 : f32 to vector<8x1xf32>
      %c0_10 = arith.constant 0 : index
      %c0_11 = arith.constant 0 : index
      %16 = vector.load %arg9[%c0_10, %c0_11] : memref<8x1xf32, #tpu.memory_space<vmem>>, vector<8x1xf32>
      tpu.vector_store %arg9[%c0_10, %c0_11], %15 {strides = array<i32>} : memref<8x1xf32, #tpu.memory_space<vmem>>, vector<8x1xf32>,
      %cst_12 = arith.constant 0.000000e+00 : f32
      %17 = vector.broadcast %cst_12 : f32 to vector<8x1xf32>
      %c0_13 = arith.constant 0 : index
      %c0_14 = arith.constant 0 : index
      %18 = vector.load %arg10[%c0_13, %c0_14] : memref<8x1xf32, #tpu.memory_space<vmem>>, vector<8x1xf32>
      tpu.vector_store %arg10[%c0_13, %c0_14], %17 {strides = array<i32>} : memref<8x1xf32, #tpu.memory_space<vmem>>, vector<8x1xf32>,
      %19 = arith.extf %0 : vector<8x32xbf16> to vector<8x32xf32>
      %c0_15 = arith.constant 0 : index
      %c0_16 = arith.constant 0 : index
      %20 = vector.load %arg5[%c0_15, %c0_16] : memref<1x32xf32, #tpu.memory_space<vmem>>, vector<1x32xf32>
      %21 = vector.broadcast %20 : vector<1x32xf32> to vector<8x32xf32>
      %22 = arith.mulf %19, %21 : vector<8x32xf32>
      %cst_17 = arith.constant dense<0.000000e+00> : vector<8xf32>
      %23 = vector.multi_reduction <add>, %22, %cst_17 [1] : vector<8x32xf32> to vector<8xf32>
      %24 = vector.shape_cast %23 : vector<8xf32> to vector<8x1xf32>
      %c0_18 = arith.constant 0 : index
      %25 = memref.load %arg6[%c0_18] : memref<1xf32, #tpu.memory_space<smem>>
      %26 = vector.broadcast %25 : f32 to vector<8x1xf32>
      %27 = arith.addf %24, %26 : vector<8x1xf32>
      %28 = arith.negf %27 : vector<8x1xf32>
      %29 = math.exp %28 : vector<8x1xf32>
      %cst_19 = arith.constant 1.000000e+00 : f32
      %30 = vector.broadcast %cst_19 : f32 to vector<8x1xf32>
      %31 = arith.addf %30, %29 : vector<8x1xf32>
      %32 = arith.divf %30, %31 : vector<8x1xf32>
      %cst_20 = arith.constant 9.99999974E-5 : f32
      %33 = vector.broadcast %cst_20 : f32 to vector<8x1xf32>
      %34 = arith.mulf %32, %33 : vector<8x1xf32>
      %c0_21 = arith.constant 0 : index
      %c0_22 = arith.constant 0 : index
      %35 = vector.load %arg11[%c0_21, %c0_22] : memref<8x1xf32, #tpu.memory_space<vmem>>, vector<8x1xf32>
      tpu.vector_store %arg11[%c0_21, %c0_22], %34 {strides = array<i32>} : memref<8x1xf32, #tpu.memory_space<vmem>>, vector<8x1xf32>,
      %c0_23 = arith.constant 0 : index
      %c0_24 = arith.constant 0 : index
      %36 = vector.load %arg8[%c0_23, %c0_24] : memref<8x1xf32, #tpu.memory_space<vmem>>, vector<8x1xf32>
      tpu.vector_store %arg8[%c0_23, %c0_24], %34 {strides = array<i32>} : memref<8x1xf32, #tpu.memory_space<vmem>>, vector<8x1xf32>,
    } else {
    }
    %c2_i32 = arith.constant 2 : i32
    %9 = arith.cmpi slt, %arg1, %c2_i32 : i32
    %10 = arith.extui %9 : i1 to i32
    %c0_i32_6 = arith.constant 0 : i32
    %11 = arith.cmpi ne, %10, %c0_i32_6 : i32
    scf.if %11 {
      %c0_9 = arith.constant 0 : index
      %c0_10 = arith.constant 0 : index
      %15 = vector.load %arg9[%c0_9, %c0_10] : memref<8x1xf32, #tpu.memory_space<vmem>>, vector<8x1xf32>
      %cst_11 = arith.constant dense<0xFF800000> : vector<8xf32>
      %16 = vector.multi_reduction <maximumf>, %5, %cst_11 [1] : vector<8x128xf32> to vector<8xf32>
      %17 = vector.shape_cast %16 : vector<8xf32> to vector<8x1xf32>
      %18 = arith.maximumf %15, %17 : vector<8x1xf32>
      %c0_12 = arith.constant 0 : index
      %c0_13 = arith.constant 0 : index
      %19 = vector.load %arg10[%c0_12, %c0_13] : memref<8x1xf32, #tpu.memory_space<vmem>>, vector<8x1xf32>
      %20 = arith.subf %15, %18 : vector<8x1xf32>
      %21 = math.exp %20 : vector<8x1xf32>
      %22 = arith.mulf %19, %21 : vector<8x1xf32>
      %23 = vector.broadcast %18 : vector<8x1xf32> to vector<8x128xf32>
      %24 = arith.subf %5, %23 : vector<8x128xf32>
      %25 = math.exp %24 : vector<8x128xf32>
      %cst_14 = arith.constant dense<0.000000e+00> : vector<8xf32>
      %26 = vector.multi_reduction <add>, %25, %cst_14 [1] : vector<8x128xf32> to vector<8xf32>
      %27 = vector.shape_cast %26 : vector<8xf32> to vector<8x1xf32>
      %28 = arith.addf %22, %27 : vector<8x1xf32>
      %c0_15 = arith.constant 0 : index
      %c0_16 = arith.constant 0 : index
      %29 = vector.load %arg10[%c0_15, %c0_16] : memref<8x1xf32, #tpu.memory_space<vmem>>, vector<8x1xf32>
      tpu.vector_store %arg10[%c0_15, %c0_16], %28 {strides = array<i32>} : memref<8x1xf32, #tpu.memory_space<vmem>>, vector<8x1xf32>,
      %c0_17 = arith.constant 0 : index
      %c0_18 = arith.constant 0 : index
      %30 = vector.load %arg9[%c0_17, %c0_18] : memref<8x1xf32, #tpu.memory_space<vmem>>, vector<8x1xf32>
      tpu.vector_store %arg9[%c0_17, %c0_18], %18 {strides = array<i32>} : memref<8x1xf32, #tpu.memory_space<vmem>>, vector<8x1xf32>,
    } else {
    }
    %c2_i32_7 = arith.constant 2 : i32
    %12 = arith.cmpi sge, %arg1, %c2_i32_7 : i32
    %13 = arith.extui %12 : i1 to i32
    %c0_i32_8 = arith.constant 0 : i32
    %14 = arith.cmpi ne, %13, %c0_i32_8 : i32
    scf.if %14 {
      %c0_9 = arith.constant 0 : index
      %c0_10 = arith.constant 0 : index
      %15 = vector.load %arg10[%c0_9, %c0_10] : memref<8x1xf32, #tpu.memory_space<vmem>>, vector<8x1xf32>
      %16 = tpu.reciprocal %15 : vector<8x1xf32> -> vector<8x1xf32>
      %c0_11 = arith.constant 0 : index
      %c0_12 = arith.constant 0 : index
      %17 = vector.load %arg9[%c0_11, %c0_12] : memref<8x1xf32, #tpu.memory_space<vmem>>, vector<8x1xf32>
      %18 = vector.broadcast %17 : vector<8x1xf32> to vector<8x128xf32>
      %19 = arith.subf %5, %18 : vector<8x128xf32>
      %20 = math.exp %19 : vector<8x128xf32>
      %21 = vector.broadcast %16 : vector<8x1xf32> to vector<8x128xf32>
      %22 = arith.mulf %20, %21 : vector<8x128xf32>
      %c0_13 = arith.constant 0 : index
      %c0_14 = arith.constant 0 : index
      %23 = vector.load %arg11[%c0_13, %c0_14] : memref<8x1xf32, #tpu.memory_space<vmem>>, vector<8x1xf32>
      %cst_15 = arith.constant 1.000000e+00 : f32
      %24 = vector.broadcast %cst_15 : f32 to vector<8x1xf32>
      %25 = arith.subf %24, %23 : vector<8x1xf32>
      %26 = vector.broadcast %25 : vector<8x1xf32> to vector<8x128xf32>
      %27 = arith.mulf %22, %26 : vector<8x128xf32>
      %c0_16 = arith.constant 0 : index
      %c0_17 = arith.constant 0 : index
      %28 = vector.load %arg7[%c0_16, %c0_17] : memref<8x128xf32, #tpu.memory_space<vmem>>, vector<8x128xf32>
      tpu.vector_store %arg7[%c0_16, %c0_17], %27 {strides = array<i32>} : memref<8x128xf32, #tpu.memory_space<vmem>>, vector<8x128xf32>,
    } else {
    }
    return
  }
  func.func @transform_0(%arg0: i32, %arg1: i32) -> (i32, i32) {
    %c0_i32 = arith.constant 0 : i32
    %c0_i32_0 = arith.constant 0 : i32
    return %arg0, %c0_i32 : i32, i32
  }
  func.func @transform_1(%arg0: i32, %arg1: i32) -> (i32, i32) {
    %c2_i32 = arith.constant 2 : i32
    %c0_i32 = arith.constant 0 : i32
    %0 = arith.cmpi eq, %c2_i32, %c0_i32 : i32
    %c1_i32 = arith.constant 1 : i32
    %1 = arith.select %0, %c1_i32, %c2_i32 : i32
    %2 = arith.remsi %arg1, %1 : i32
    %c0_i32_0 = arith.constant 0 : i32
    %3 = arith.cmpi ne, %2, %c0_i32_0 : i32
    %c0_i32_1 = arith.constant 0 : i32
    %4 = arith.cmpi slt, %2, %c0_i32_1 : i32
    %c0_i32_2 = arith.constant 0 : i32
    %5 = arith.cmpi slt, %1, %c0_i32_2 : i32
    %6 = arith.xori %4, %5 : i1
    %7 = arith.andi %6, %3 : i1
    %8 = arith.addi %2, %1 : i32
    %9 = arith.select %7, %8, %2 : i32
    %c0_i32_3 = arith.constant 0 : i32
    %c0_i32_4 = arith.constant 0 : i32
    return %c0_i32_3, %9 : i32, i32
  }
  func.func @transform_2(%arg0: i32, %arg1: i32) -> (i32, i32) {
    %c2_i32 = arith.constant 2 : i32
    %c0_i32 = arith.constant 0 : i32
    %0 = arith.cmpi eq, %c2_i32, %c0_i32 : i32
    %c1_i32 = arith.constant 1 : i32
    %1 = arith.select %0, %c1_i32, %c2_i32 : i32
    %2 = arith.remsi %arg1, %1 : i32
    %c0_i32_0 = arith.constant 0 : i32
    %3 = arith.cmpi ne, %2, %c0_i32_0 : i32
    %c0_i32_1 = arith.constant 0 : i32
    %4 = arith.cmpi slt, %2, %c0_i32_1 : i32
    %c0_i32_2 = arith.constant 0 : i32
    %5 = arith.cmpi slt, %1, %c0_i32_2 : i32
    %6 = arith.xori %4, %5 : i1
    %7 = arith.andi %6, %3 : i1
    %8 = arith.addi %2, %1 : i32
    %9 = arith.select %7, %8, %2 : i32
    %c0_i32_3 = arith.constant 0 : i32
    %c0_i32_4 = arith.constant 0 : i32
    return %c0_i32_3, %9 : i32, i32
  }
  func.func @transform_3(%arg0: i32, %arg1: i32) -> (i32, i32) {
    %c0_i32 = arith.constant 0 : i32
    %c0_i32_0 = arith.constant 0 : i32
    %c0_i32_1 = arith.constant 0 : i32
    return %c0_i32, %c0_i32_0 : i32, i32
  }
  func.func @transform_4(%arg0: i32, %arg1: i32) -> i32 {
    %c0_i32 = arith.constant 0 : i32
    %c0_i32_0 = arith.constant 0 : i32
    return %c0_i32 : i32
  }
  func.func @transform_5(%arg0: i32, %arg1: i32) -> (i32, i32) {
    %c2_i32 = arith.constant 2 : i32
    %0 = arith.subi %arg1, %c2_i32 : i32
    %c0_i32 = arith.constant 0 : i32
    %1 = arith.maxsi %0, %c0_i32 : i32
    %c0_i32_0 = arith.constant 0 : i32
    return %arg0, %1 : i32, i32
  }
  func.func @transform_6(%arg0: i32, %arg1: i32) -> (i32, i32) {
    %c0_i32 = arith.constant 0 : i32
    %c0_i32_0 = arith.constant 0 : i32
    return %arg0, %c0_i32 : i32, i32
  }
}

</mosaic_0001>

<bundles_post_ra>
// kernel: tpu_custom_call.1
= control target key start
LH: loop header
LB: loop body
LE: loop exit
PB: predicated region body
PF: predicated region fallthrough
CT: control target
= control target key end

     0   :  { %s1649_s0 = inlined_call_operand.hbm [shape: bf16[16,32], index: 0, kind: input, shape index: {}]   ;;  %s1650_s1 = inlined_call_operand.hbm [shape: bf16[32,256], index: 1, kind: input, shape index: {}]   ;;  %s1651_s2 = inlined_call_operand.vmem [shape: f32[1,256], index: 2, kind: input, shape index: {}]   ;;  %s1652_s3 = inlined_call_operand.vmem [shape: f32[1,32], index: 3, kind: input, shape index: {}]   ;;  %s1653_s4 = inlined_call_operand.<no memory space> [shape: f32[1], index: 4, kind: input, shape index: {}]   ;;  %s1654_s5 = inlined_call_operand.hbm [shape: f32[16,256], index: 5, kind: output, shape index: {0}]   ;;  %s1655_s6 = inlined_call_operand.vmem [shape: f32[16,1], index: 6, kind: output, shape index: {1}]  }
   0x1   :  { %1668 = sst [smem:[#allocation22_spill]] %s1649_s0 }
   0x2   :  { %1669 = sst [smem:[#allocation23_spill]] %s1651_s2 }
   0x3   :  { %1670 = sst [smem:[#allocation24_spill]] %s1652_s3 }
   0x4   :  { %1671 = sst [smem:[#allocation25_spill]] %s1654_s5 }
   0x5   :  { %1672 = sst [smem:[#allocation26_spill]] %s1655_s6 }
   0x6   :  { %12 = sst [smem:[#allocation5]] %s1653_s4 }
   0x7   :  { %13 = vsyncpa [#allocation7], 0 }
   0x8   :  { %15 = vsyncpa [#allocation7 + $0x1], 0 }
   0x9   :  { %16 = vsyncpa [#allocation10], 0 }
   0xa   :  { %18 = vsyncpa [#allocation10 + $0x1], 0 }
   0xb   :  { %19 = vsyncpa [#allocation8], 0 }
   0xc   :  { %21 = vsyncpa [#allocation8 + $0x1], 0  ;;  %s1287_s23 = smov 0   ;;  %s1289_s24 = smov 0  }
   0xd   :  { %s1291_s25 = smov 0   ;;  %s1293_s26 = smov 0  }
   0xe   :  { %s1295_s27 = smov 0   ;;  %s1297_s28 = smov 0  }
   0xf   :  { %s1299_s29 = smov 0   ;;  %s1301_s4 = smov 0  }
  0x10   :  { %s1303_s30 = smov 0   ;;  %s1305_s7 = smov 0  }
  0x11   :  { %s1307_s8 = smov 0   ;;  %s1309_s9 = smov 0  }
  0x12   :  { %s1311_s10 = smov 0   ;;  %s1313_s11 = smov 0  }
  0x13 LB: > { %1673 = sst [smem:[#allocation15_spill]] %s1183_s23  ;;  %s1656_s12 = sadd.s32 4294967295, %s1235_s11   ;;  %s1235_s11 = sphi %s1313_s11, %s27_s11   ;;  %s1231_s10 = sphi %s1311_s10, %s1725_s10   ;;  %s1227_s9 = sphi %s1309_s9, %s1724_s9   ;;  %s1223_s8 = sphi %s1307_s8, %s1723_s8   ;;  %s1219_s7 = sphi %s1305_s7, %s1722_s7   ;;  %s1215_s30 = sphi %s1303_s30, %s1721_s30   ;;  %s1211_s4 = sphi %s1301_s4, %s1720_s4   ;;  %s1207_s29 = sphi %s1299_s29, %s1719_s29   ;;  %s1203_s28 = sphi %s1297_s28, %s1718_s28   ;;  %s1199_s27 = sphi %s1295_s27, %s1717_s27   ;;  %s1195_s26 = sphi %s1293_s26, %s1716_s26   ;;  %s1191_s25 = sphi %s1291_s25, %s1715_s25   ;;  %s1187_s24 = sphi %s1289_s24, %s1714_s24   ;;  %s1183_s23 = sphi %s1287_s23, %s1713_s23  }
  0x14   : > { %1674 = sst [smem:[#allocation16_spill]] %s1219_s7  ;;  %s36_s14 = sadd.s32 1, %s1227_s9 }
  0x15   : > { %1675 = sst [smem:[#allocation17_spill]] %s1223_s8  ;;  %s39_s15 = sadd.s32 1, %s1231_s10 }
  0x16   : > { %p37_p0 = scmp.ge.s32.totalorder %s36_s14, 4  ;;  %s46_s16 = sadd.s32 1, %s1215_s30 }
  0x17   : > { %p53_p1 = scmp.ne.s32.totalorder %s1215_s30, %s1211_s4  ;;  %p54_p2 = scmp.eq.s32.totalorder %s1235_s11, 0 }
  0x18   : > { %s1727_s14 = smov (%p37_p0, %s36_s14), 0  ;;  %s1729_s15 = smov (!%p37_p0, %s39_s15), %s1231_s10 }
  0x19   : > { %1676 = sst [smem:[#allocation18_spill]] %s1727_s14  ;;  %p1366_p3 = por %p54_p2, %p53_p1 }
  0x1a   : > { %p59_p4 = scmp.ne.s32.totalorder %s1211_s4, %s1207_s29  ;;  %p41_p5 = scmp.ge.s32.totalorder %s1729_s15, 2 }
  0x1b   : > { %p60_p6 = scmp.eq.s32.totalorder %s1656_s12, 0  ;;  %p103_p7 = scmp.ne.s32.totalorder %s1203_s28, %s1199_s27 }
  0x1c   : > { %s1731_s15 = smov (%p41_p5, %s1729_s15), 0  ;;  %p109_p10 = scmp.ne.s32.totalorder %s1199_s27, %s1195_s26 }
  0x1d   : > { %1678 = sst [smem:[#allocation19_spill]] %s1731_s15  ;;  %p1377_p8 = por %p60_p6, %p59_p4 }
  0x1e   : > { %p1381_p9 = por %p103_p7, %p54_p2  ;;  %s43_s20 = ssub.s32 %s1231_s10, %s1731_s15 }
  0x1f   : > { %s1679_s18 = scalar_select %p1377_p8, 1, 0 }
  0x20   : > { %p44_p11 = scmp.eq.s32.totalorder %s43_s20, 0  ;;  %s823_s21 = sadd.s32 4294967294, %s1227_s9 }
  0x21   : > { %p1390_p12 = por %p109_p10, %p60_p6  ;;  %p212_p13 = scmp.gt.s32.totalorder %s823_s21, 0 }
  0x22   : > { %s1395_s29 = scalar_select %p44_p11, %s1215_s30, %s46_s16  }
  0x23   : > { %s1681_s22 = scalar_select %p1390_p12, 1, 0 }
  0x24   : > { %1682 = sst [smem:[#allocation20_spill]] %s1395_s29  ;;  %s1733_s21 = smov (!%p212_p13, %s823_s21), 0 }
  0x25   : > { %s824_s13 = sadd.s32 4294967294, %s1727_s14  ;;  %s222_s12 = sadd.s32 1, %s1191_s25 }
  0x26   : > { %p215_p0 = scmp.gt.s32.totalorder %s824_s13, 0  ;;  %p232_p1 = scmp.ne.s32.totalorder %s1191_s25, %s1187_s24 }
  0x27   : > { %s1683_s15 = sadd.s32 4294967295, %s1235_s11   ;;  %p238_p4 = scmp.ne.s32.totalorder %s1187_s24, %s1183_s23 }
  0x28   : > { %p233_p2 = scmp.eq.s32.totalorder %s1683_s15, 7  ;;  %s1735_s13 = smov (!%p215_p0, %s824_s13), 0 }
  0x29   : > { %s1686_s5 = sadd.s32 4294967294, %s1235_s11   ;;  %s218_s16 = ssub.s32 %s1733_s21, %s1735_s13 }
  0x2a   : > { %p1405_p5 = por %p233_p2, %p232_p1  ;;  %p239_p6 = scmp.eq.s32.totalorder %s1686_s5, 7 }
  0x2b   : > { %s219_s29 = sor.u32 %s218_s16, %s43_s20  ;;  %p885_p11 = scmp.lt.s32.totalorder %s1235_s11, 8 }
  0x2c   : > { %s1684_s26 = scalar_select %p1405_p5, 1, 0 }
  0x2d   : > { %p1411_p7 = por %p239_p6, %p238_p4  ;;  %p220_p10 = scmp.eq.s32.totalorder %s219_s29, 0 }
  0x2e   : > { %1685 = sst [smem:[#allocation21_spill]] %s1684_s26  ;;  %s291_s15 = sand.u32 1, %s1215_s30  }
  0x2f   : > { %s1687_s3 = scalar_select %p1411_p7, 1, 0 }
  0x30   : > { %s828_s23 = sshll.u32 %s1231_s10, 6  ;;  %s827_s6 = sshll.u32 %s291_s15, 2 }
  0x31   : > { %s1419_s2 = scalar_select %p220_p10, %s1191_s25, %s222_s12  }
  0x32   : > { %s1688_s0 = sld [smem:[#allocation22_spill]]  ;;  %s295_s5 = scalar_lea.vmem [#allocation6], %s827_s6 }
  0x33   : > { %s302_s13 = sshll.u32 %s295_s5, 4  ;;  %p1428_p13 = pnand %p885_p11, %p1366_p3  ;;  %s1432_s13 = int_to_ptr.vmem [resolvable:$true] %s302_s13 }
  0x34   : > { %p1436_p0 = pnand %p885_p11, %p1381_p9 }
  0x35   : > { %p1027_p4 = pneg %p1428_p13 }
  0x38   : > { %s1424_s26 = scalar_lea.hbm %s1688_s0, %s828_s23  ;;  %s292_s23 = scalar_lea.sflag [#allocation7], %s291_s15 }
  0x39   : > { %s1025_s8 = scalar_lea.hbm %s1424_s26, 64  ;;  %s1030_s17 = scalar_lea.hbm %s1688_s0, 128 }
  0x3a   : > { %p1026_p2 = scmp.ne.s32.totalorder %s1424_s26, %s1025_s8  ;;  %p1031_p9 = scmp.lt.u32.totalorder %s1424_s26, %s1688_s0 }
  0x3b   : > { %p1032_p10 = scmp.lt.u32.totalorder %s1030_s17, %s1025_s8  ;;  %p1034_p1 = scmp.lt.u32.totalorder %s1025_s8, %s1424_s26 }
  0x3c   : > { %p1028_p3 = pnand %p1027_p4, %p1026_p2 }
  0x3d   : > { %p1033_p11 = por %p1032_p10, %p1031_p9 }
  0x3e   : > { %p1029_p6 = pneg %p1028_p3 }
  0x3f   : > { %p1035_p7 = por %p1034_p1, %p1033_p11 }
  0x41   : > { %p1036_p5 = pnand %p1035_p7, %p1029_p6 }
  0x43   : > { %1039 = shalt.err (!%p1036_p5)
}
  0x44   : > { %s1040_s29 = scalar_lea.vmem %s1432_s13, 64  ;;  %s1237_s16 = smov [#allocation6]  }
  0x45   : > { %p1041_p2 = scmp.ne.s32.totalorder %s1432_s13, %s1040_s29  ;;  %s1045_s15 = sshll.u32 %s1237_s16, 4  ;;  %s1046_s15 = int_to_ptr.vmem [resolvable:$false] %s1045_s15 }
  0x46   : > { %s1047_s5 = scalar_lea.vmem %s1046_s15, 128  ;;  %p1048_p8 = scmp.lt.s32.totalorder %s1432_s13, %s1046_s15 }
  0x47   : > { %p1043_p3 = pnand %p1041_p2, %p1027_p4  ;;  %p1049_p9 = scmp.lt.s32.totalorder %s1047_s5, %s1040_s29 }
  0x49   : > { %p1044_p12 = pneg %p1043_p3  ;;  %p1050_p10 = por %p1049_p9, %p1048_p8 }
  0x4b   : > { %p1051_p1 = pnand %p1050_p10, %p1044_p12 }
  0x4d   : > { %1054 = shalt.err (!%p1051_p1)
}
  0x4e   : > { %877 = dma.hbm_to_vmem [thread:$0]  (!%p1428_p13), %s1424_s26, 64, %s1432_s13, %s292_s23  }
  0x4f   : > { %p369_p5 = scmp.lt.s32.totalorder %s1235_s11, 9  ;;  %s70_s8 = ssub.s32 0, %s1227_s9 }
  0x50   : > { %p1691_p7 = scmp.ge.s32.totalorder %s1235_s11, 1  ;;  %s811_s12 = smin.u32 %s1227_s9, %s70_s8 }
  0x51   : > { %s72_s20 = sand.u32 1, %s811_s12   ;;  %s82_s17 = ssub.s32 0, %s1727_s14 }
  0x52   : > { %p1470_p4 = pnand %p1691_p7, %p369_p5  ;;  %s814_s21 = smin.u32 %s82_s17, %s1727_s14 }
  0x53   : > { %s84_s19 = sand.u32 1, %s814_s21   ;;  %s96_s29 = sadd.s32 1, %s1203_s28 }
  0x54   : > { %p813_p8 = scmp.lt.s32.totalorder %s72_s20, 0  ;;  %s79_s16 = sadd.s32 2, %s72_s20 }
  0x55   : > { %s309_s15 = sand.u32 1, %s1203_s28   ;;  %p816_p12 = scmp.lt.s32.totalorder %s84_s19, 0 }
  0x56   : > { %s1737_s16 = smov (!%p813_p8, %s79_s16), %s72_s20  ;;  %s829_s26 = sshll.u32 %s309_s15, 4 }
  0x57   : > { %s91_s13 = sadd.s32 2, %s84_s19  ;;  %s833_s23 = sshll.u32 %s1737_s16, 6 }
  0x58   : > { %s1739_s13 = smov (!%p816_p12, %s91_s13), %s84_s19  ;;  %s1482_s8 = scalar_lea.hbm %s1650_s1, %s833_s23 }
  0x59   : > { %s313_s12 = scalar_lea.vmem [#allocation9], %s829_s26  ;;  %s93_s21 = ssub.s32 %s1737_s16, %s1739_s13 }
  0x5a   : > { %s331_s17 = sshll.u32 %s313_s12, 4  ;;  %p94_p13 = scmp.eq.s32.totalorder %s93_s21, 0  ;;  %s1484_s17 = int_to_ptr.vmem [resolvable:$true] %s331_s17 }
  0x5b   : > { %s1489_s14 = scalar_lea.sflag [#allocation10], %s309_s15  ;;  %s1055_s19 = scalar_lea.hbm %s1482_s8, 256 }
  0x5c   : > { %s1487_s20 = scalar_select %p94_p13, %s1203_s28, %s96_s29  }
  0x5d   : > { %p1056_p6 = scmp.ne.s32.totalorder %s1482_s8, %s1055_s19  ;;  %p1057_p11 = pneg %p1436_p0 }
  0x5e   : > { %s1060_s23 = scalar_lea.hbm %s1650_s1, 512  ;;  %p1061_p9 = scmp.lt.u32.totalorder %s1482_s8, %s1650_s1 }
  0x5f   : > { %p1058_p2 = pnand %p1057_p11, %p1056_p6  ;;  %p1062_p10 = scmp.lt.u32.totalorder %s1060_s23, %s1055_s19 }
  0x60   : > { %p1064_p5 = scmp.lt.u32.totalorder %s1055_s19, %s1482_s8 }
  0x61   : > { %p1059_p3 = pneg %p1058_p2  ;;  %p1063_p1 = por %p1062_p10, %p1061_p9 }
  0x63   : > { %p1065_p7 = por %p1064_p5, %p1063_p1 }
  0x65   : > { %p1066_p8 = pnand %p1065_p7, %p1059_p3 }
  0x67   : > { %1069 = shalt.err (!%p1066_p8)
}
  0x68   : > { %s1070_s29 = scalar_lea.vmem %s1484_s17, 256  ;;  %s1238_s15 = smov [#allocation9]  }
  0x69   : > { %p1071_p12 = scmp.ne.s32.totalorder %s1484_s17, %s1070_s29  ;;  %s1075_s5 = sshll.u32 %s1238_s15, 4  ;;  %s1076_s5 = int_to_ptr.vmem [resolvable:$false] %s1075_s5 }
  0x6a   : > { %s1077_s12 = scalar_lea.vmem %s1076_s5, 512  ;;  %p1078_p2 = scmp.lt.s32.totalorder %s1484_s17, %s1076_s5 }
  0x6b   : > { %p1073_p13 = pnand %p1071_p12, %p1057_p11  ;;  %p1079_p9 = scmp.lt.s32.totalorder %s1077_s12, %s1070_s29 }
  0x6d   : > { %p1074_p6 = pneg %p1073_p13  ;;  %p1080_p10 = por %p1079_p9, %p1078_p2 }
  0x6f   : > { %p1081_p1 = pnand %p1080_p10, %p1074_p6 }
  0x71   : > { %1084 = shalt.err (!%p1081_p1)
}
  0x72   : > { %s1239_s21 = smov 128   ;;  %s1240_s19 = smov 64  }
  0x73   : > { %s1241_s0 = smov 4   ;;  %373 = sbr.rel (%p1470_p4) target bundleno = 975 (0x3cf), region = 40 }
  0x74   : > { %880 = dma.hbm_to_vmem [thread:$0]  (!%p1436_p0), %s1482_s8, 256, %s1484_s17, %s1489_s14, %s1239_s21, %s1240_s19, %s1241_s0  }
  0x75   : > { %s375_s26 = sand.u32 (!%p1470_p4), 1, %s1211_s4   ;;  %p1693_p11 = scmp.ne.s32.totalorder (!%p1470_p4), %s1679_s18, 0 }
  0x76   : > { %s835_s23 = sshll.u32 (!%p1470_p4), %s375_s26, 2  ;;  %s376_s16 = scalar_lea.sflag (!%p1470_p4), [#allocation7], %s375_s26 }
  0x77   : > { %s379_s13 = scalar_lea.vmem (!%p1470_p4), [#allocation6], %s835_s23 }
  0x7a   : > { %1170 = dma.done.wait (%p1693_p11), %s376_s16, 64  }
  0x7b   : > { %1172 = vsyncadd (%p1693_p11), %s376_s16, 4294967232  ;;  %s384_s29 = sand.u32 1, %s1199_s27   ;;  %p1694_p0 = scmp.ne.s32.totalorder %s1681_s22, 0 }
  0x7c   : > { %s836_s15 = sshll.u32 %s384_s29, 4  ;;  %s385_s7 = scalar_lea.sflag [#allocation10], %s384_s29 }
  0x7d   : > { %s388_s14 = scalar_lea.vmem [#allocation9], %s836_s15 }
  0x7e   : > { %1174 = dma.done.wait (%p1694_p0), %s385_s7, 256  }
  0x7f   : > { %1176 = vsyncadd (%p1694_p0), %s385_s7, 4294967040  ;;  %s1695_s6 = sld [smem:[#allocation17_spill]]  ;;  %s432_s8 = sand.u32 1, %s1187_s24   ;;  %v1242_v0 = vmov 0.0   ;;  %vm1243_vm0 = vmmov 0   ;;  %v1008_v1 = vld [vmem:[%s388_s14] sm:$0xff]  }
  0x80   : > { %s1533_s18 = sshll.u32 %s432_s8, 3  ;;  %s1696_s17 = sld [smem:[#allocation16_spill]]  ;;  %860 = vmatprep.subr.bf16.mxu0 %v1242_v0  ;;  %864 = vmatprep.mubr.msk.bf16.mxu0 %vm1243_vm0, %v1242_v0  ;;  %v1009_v2 = vld [vmem:[%s388_s14 + $0x8] sm:$0xff]   ;;  %vm512_vm1 = vcmask 261120  }
  0x81   : > { %s1697_s21 = sld [smem:[#allocation26_spill]]  ;;  %861 = vmatpush3.bf16.msra.mxu0 %v1008_v1  ;;  %v488_v3 = vld [vmem:[%s379_s13] sm:$0xf]  ;;  %s1698_s14 = sld [smem:[#allocation23_spill]] }
  0x82   : > { %862 = vmatprep.subr.bf16.mxu0 %v1242_v0  ;;  %s434_s13 = scalar_lea.vmem [#allocation11], %s1533_s18 }
  0x85   : > { %p483_p4 = scmp.lt.s32.totalorder %s1695_s6, 1  ;;  %863 = vmatpush3.bf16.msra.mxu0 %v1009_v2 }
  0x86   : > { %s454_s0 = ssub.s32 0, %s1696_s17  ;;  %p453_p3 = scmp.lt.s32.totalorder %s1696_s17, 0 }
  0x87   : > { %s1741_s6 = smov (!%p483_p4, %s1695_s6), 1  ;;  %s838_s26 = smin.u32 %s1696_s17, %s454_s0 }
  0x88   : > { %s841_s5 = sshll.u32 %s1741_s6, 3  ;;  %865 = vmatmul.mubr.msk.bf16.vlgmr.msra.gmra.mrb[0].mxu0 %vm512_vm1, %v488_v3  ;;  %s456_s23 = sand.u32 1, %s838_s26  }
  0x89   : > { %s1539_s19 = scalar_lea.vmem %s1697_s21, %s841_s5  ;;  %s457_s16 = ssub.s32 0, %s456_s23 }
  0x8a   : > { %s1743_s16 = smov (!%p453_p3, %s457_s16), %s456_s23  ;;  %p846_p8 = scmp.ne.s32.totalorder %s1696_s17, 0 }
  0x8b   : > { %p840_p5 = scmp.lt.s32.totalorder %s1743_s16, 0  ;;  %s463_s29 = sadd.s32 2, %s1743_s16  ;;  %v563_v10 = vunpack.c.l.bf16 (!%p846_p8), %v488_v3  ;;  %vm560_vm2 = vcmask (!%p846_p8), 7168   ;;  %v1244_v12 = vmov (!%p846_p8), -inf   ;;  %v1245_v13 = vmov (!%p846_p8), 0.0  }
  0x8c   : > { %s1699_s12 = sld [smem:[#allocation24_spill]] (!%p846_p8)  ;;  %561 = vst.msk [vmem:[#allocation2] sm:$0xff] (!%p846_p8), %vm560_vm2, %v1244_v12  ;;  %562 = vst.msk [vmem:[#allocation3] sm:$0xff] (!%p846_p8), %vm560_vm2, %v1245_v13  ;;  %s575_s21 = sld [smem:[#allocation5]] (!%p846_p8) }
  0x8d   : > { %s1745_s29 = smov (!%p840_p5, %s463_s29), %s1743_s16 }
  0x8e   : > { %p465_p7 = scmp.lt.s32.totalorder %s1745_s29, 1 }
  0x90   : > { %s1747_s29 = smov (!%p465_p7, %s1745_s29), 1 }
  0x91   : > { %s467_s6 = scalar_lea.vmem %s1698_s14, %s1747_s29 }
  0x92   : > { %v842_v4 = vld [vmem:[%s467_s6] ss:$0 sm:$0xff]  ;;  %v576_v16 = vstv (!%p846_p8), %s575_s21 }
  0x93   : > { %v847_v11 = vld [vmem:[%s1699_s12] ss:$0 sm:$0xff] (!%p846_p8) }
  0x94   : > { %v571_v14 = vmul.f32 (!%p846_p8), %v847_v11, %v563_v10 }
  0x96   : > { %v572_v15 = vsel (!%p846_p8), %vm512_vm1, %v571_v14, 0.0 }
  0x97   : > { %573 = vadd.xlane.f32.xlu0 (!%p846_p8), %v572_v15 }
 0x124   : > { %v574_v17 = vpop.xlane.xlu0 (!%p846_p8), %573 }
 0x125   : > { %v577_v18 = vadd.f32 (!%p846_p8), %v576_v16, %v574_v17 }
 0x127   : > { %v848_v19 = vmul.f32 (!%p846_p8), -1.442695, %v577_v18 }
 0x129   : > { %1010 = vpow2.f32 (!%p846_p8), %v848_v19 }
 0x133   : > { %v1011_v20 = vpop.eup (!%p846_p8), %1010 }
 0x134   : > { %v581_v21 = vadd.f32 (!%p846_p8), 1.0, %v1011_v20 }
 0x136   : > { %1012 = vrcp.f32 (!%p846_p8), %v581_v21 }
 0x140   : > { %v1013_v22 = vpop.eup (!%p846_p8), %1012 }
 0x141   : > { %v584_v23 = vmul.f32 (!%p846_p8), 0.0001, %v1013_v22 }
 0x143   : > { %585 = vst.msk [vmem:[#allocation4] sm:$0xff] (!%p846_p8), %vm560_vm2, %v584_v23  ;;  %586 = vst.msk [vmem:[%s1539_s19] sm:$0xff] (!%p846_p8), %vm560_vm2, %v584_v23 }
 0x158   : > { %559 = sbr.rel (%p846_p8) target bundleno = 351 (0x15f), region = 52 }
 0x15b   : > { %v550_v5 = vpop.f32.mrb[0].mxu0 }
 0x15c   : > { %v1548_v6 = vadd.f32 %v842_v4, %v550_v5  ;;  %v866_v7 = vpop.f32.mrb[1].mxu0 }
 0x15d   : > { %v553_v8 = vpop.f32.mrb[2].mxu0 }
 0x15e   : > { %v867_v9 = vpop.f32.mrb[3].mxu0 }
 0x15f PF: > { %s1700_s17 = sld [smem:[#allocation16_spill]] }
 0x165   : > { %p849_p12 = scmp.ge.s32.totalorder %s1700_s17, 2 }
 0x166   : > { %592 = vmax.xlane.f32.xlu0 (!%p849_p12), %v1548_v6  ;;  %v1246_v24 = vmov (!%p849_p12), 0   ;;  %v591_v25 = vld [vmem:[#allocation2] sm:$0xff] (!%p849_p12)  ;;  %vm611_vm3 = vcmask (!%p849_p12), 7168   ;;  %v595_v35 = vld [vmem:[#allocation3] sm:$0xff] (!%p849_p12) }
 0x167   : > { %590 = sbr.rel (%p849_p12) target bundleno = 790 (0x316), region = 56  ;;  %1014 = vset.pattern.permute.xlu0 (!%p849_p12), %v1246_v24 }
 0x1f3   : > { %v593_v26 = vpop.xlane.xlu0 %592 }
 0x1f4   : > { %v594_v27 = vmax.f32 %v591_v25, %v593_v26 }
 0x1f6   : > { %v596_v28 = vsub.f32 %v591_v25, %v594_v27  ;;  %613 = vst.msk [vmem:[#allocation2] sm:$0xff] %vm611_vm3, %v594_v27  ;;  %602 = vperm.xlu0 %1014, %v594_v27  }
 0x1f8   : > { %v597_v33 = vmul.f32 1.442695, %v596_v28 }
 0x275   : > { %v603_v29 = vpop.permute.xlu0 %602 }
 0x276   : > { %v605_v30 = vsub.f32 %v1548_v6, %v603_v29 }
 0x278   : > { %v606_v31 = vmul.f32 1.442695, %v605_v30 }
 0x27a   : > { %1015 = vpow2.f32 %v606_v31 }
 0x27b   : > { %1017 = vpow2.f32 %v597_v33 }
 0x284   : > { %v1016_v32 = vpop.eup %1015 }
 0x285   : > { %608 = vadd.xlane.f32.xlu1 %v1016_v32  ;;  %v1018_v34 = vpop.eup %1017 }
 0x286   : > { %v599_v36 = vmul.f32 %v1018_v34, %v595_v35 }
 0x312   : > { %v609_v37 = vpop.xlane.xlu1 %608 }
 0x313   : > { %v610_v38 = vadd.f32 %v609_v37, %v599_v36 }
 0x315   : > { %612 = vst.msk [vmem:[#allocation3] sm:$0xff] %vm611_vm3, %v610_v38 }
 0x316 PF: > { %s1701_s19 = sld [smem:[#allocation16_spill]] }
 0x31c   : > { %p850_p13 = scmp.lt.s32.totalorder %s1701_s19, 2 }
 0x31d   : > { %v620_v39 = vld [vmem:[#allocation2] sm:$0xff] (!%p850_p13)  ;;  %v618_v40 = vld [vmem:[#allocation3] sm:$0xff] (!%p850_p13)  ;;  %v635_v41 = vld [vmem:[#allocation4] sm:$0xff] (!%p850_p13)  ;;  %v1247_v42 = vmov (!%p850_p13), 0  }
 0x31e   : > { %617 = sbr.rel (%p850_p13) target bundleno = 947 (0x3b3), region = 60  ;;  %1019 = vset.pattern.permute.xlu0 (!%p850_p13), %v1247_v42  ;;  %1021 = vrcp.f32 (!%p850_p13), %v618_v40  ;;  %1020 = vset.pattern.permute.xlu1 (!%p850_p13), %v1247_v42  ;;  %v636_v43 = vsub.f32 (!%p850_p13), 1.0, %v635_v41 }
 0x31f   : > { %623 = vperm.xlu0 (!%p850_p13), %1019, %v620_v39  }
 0x320   : > { %639 = vperm.xlu1 (!%p850_p13), %1020, %v636_v43  }
 0x328   : > { %v1022_v44 = vpop.eup %1021 }
 0x329   : > { %631 = vperm.xlu0 %1019, %v1022_v44  }
 0x39e   : > { %v624_v45 = vpop.permute.xlu0 %623 }
 0x39f   : > { %v626_v46 = vsub.f32 %v1548_v6, %v624_v45  ;;  %v640_v50 = vpop.permute.xlu1 %639 }
 0x3a1   : > { %v627_v47 = vmul.f32 1.442695, %v626_v46 }
 0x3a3   : > { %1023 = vpow2.f32 %v627_v47 }
 0x3a8   : > { %v632_v49 = vpop.permute.xlu0 %631 }
 0x3ad   : > { %v1024_v48 = vpop.eup %1023 }
 0x3ae   : > { %v634_v51 = vmul.f32 %v1024_v48, %v632_v49 }
 0x3b0   : > { %v642_v52 = vmul.f32 %v640_v50, %v634_v51 }
 0x3b2   : > { %643 = vst [vmem:[%s434_s13] sm:$0xff] %v642_v52 }
 0x3b3 PF: > { %s1702_s0 = sld [smem:[#allocation16_spill]]  ;;  %s1703_s26 = sld [smem:[#allocation17_spill]] }
 0x3b4   : > { %s1704_s23 = sld [smem:[#allocation21_spill]]  ;;  %s667_s15 = sshll.u32 %s434_s13, 4  ;;  %s1574_s15 = int_to_ptr.vmem [resolvable:$true] %s667_s15 }
 0x3b5   : > { %s1705_s22 = sld [smem:[#allocation25_spill]]  ;;  %s645_s21 = scalar_lea.sflag [#allocation8], %s432_s8 }
 0x3b6   : > { %s1085_s17 = scalar_lea.vmem %s1574_s15, 128  ;;  %s1248_s18 = smov [#allocation11]  }
 0x3b7   : > { %p1086_p2 = scmp.ne.s32.totalorder %s1574_s15, %s1085_s17  ;;  %s1089_s13 = sshll.u32 %s1248_s18, 4  ;;  %s1090_s13 = int_to_ptr.vmem [resolvable:$false] %s1089_s13 }
 0x3b8   : > { %s1091_s19 = scalar_lea.vmem %s1090_s13, 256  ;;  %p1092_p11 = scmp.lt.s32.totalorder %s1574_s15, %s1090_s13 }
 0x3b9   : > { %s852_s16 = sadd.s32 4294967294, %s1702_s0  ;;  %s853_s29 = sshll.u32 %s1703_s26, 1 }
 0x3ba   : > { %p657_p6 = scmp.gt.s32.totalorder %s852_s16, 0  ;;  %p1706_p9 = scmp.ne.s32.totalorder %s1704_s23, 0 }
 0x3bb   : > { %p1093_p0 = scmp.lt.s32.totalorder %s1091_s19, %s1085_s17 }
 0x3bc   : > { %s1749_s16 = smov (!%p657_p6, %s852_s16), 0  ;;  %p1087_p10 = pnand %p1086_p2, %p1706_p9 }
 0x3bd   : > { %s663_s7 = sadd.s32 %s853_s29, %s1749_s16  ;;  %p1094_p4 = por %p1093_p0, %p1092_p11 }
 0x3be   : > { %s854_s14 = sshll.u32 %s663_s7, 7  ;;  %p1088_p1 = pneg %p1087_p10 }
 0x3bf   : > { %s665_s12 = scalar_lea.hbm %s1705_s22, %s854_s14 }
 0x3c0   : > { %p1095_p3 = pnand %p1094_p4, %p1088_p1 }
 0x3c2   : > { %1098 = shalt.err (!%p1095_p3)
}
 0x3c3   : > { %s1099_s0 = scalar_lea.hbm %s665_s12, 128  ;;  %s1103_s16 = scalar_lea.hbm %s1705_s22, 512 }
 0x3c4   : > { %p1100_p5 = scmp.ne.s32.totalorder %s665_s12, %s1099_s0  ;;  %p1104_p12 = scmp.lt.u32.totalorder %s665_s12, %s1705_s22 }
 0x3c5   : > { %p1105_p13 = scmp.lt.u32.totalorder %s1103_s16, %s1099_s0  ;;  %p1107_p2 = scmp.lt.u32.totalorder %s1099_s0, %s665_s12 }
 0x3c6   : > { %p1101_p7 = pnand %p1100_p5, %p1706_p9 }
 0x3c7   : > { %p1106_p6 = por %p1105_p13, %p1104_p12 }
 0x3c8   : > { %p1102_p8 = pneg %p1101_p7 }
 0x3c9   : > { %p1108_p10 = por %p1107_p2, %p1106_p6 }
 0x3cb   : > { %p1109_p1 = pnand %p1108_p10, %p1102_p8 }
 0x3cd   : > { %1112 = shalt.err (!%p1109_p1)
}
 0x3ce   : > { %872 = dma.vmem_to_hbm [thread:$0]  (%p1706_p9), %s1574_s15, 128, %s665_s12, %s645_s21  }
 0x3cf PF: > { %s1707_s14 = sld [smem:[#allocation15_spill]]  ;;  %p886_p11 = scmp.ge.s32.totalorder %s1235_s11, 2 }
 0x3d0   : > { %p1708_p0 = scmp.ne.s32.totalorder %s1687_s3, 0 }
 0x3d2   : > { %p882_p4 = pnand %p886_p11, %p1708_p0 }
 0x3d5   : > { %s682_s6 = sand.u32 1, %s1707_s14  }
 0x3d6   : > { %s683_s5 = scalar_lea.sflag [#allocation8], %s682_s6 }
 0x3d7   : > { %1178 = dma.done.wait (!%p882_p4), %s683_s5, 128  }
 0x3d8   : > { %1180 = vsyncadd (!%p882_p4), %s683_s5, 4294967168  ;;  %s27_s11 = sadd.s32 1, %s1235_s11   ;;  %s1710_s15 = sld [smem:[#allocation20_spill]] }
 0x3d9   : > { %p1602_p3 = scmp.ge.s32.totalorder %s27_s11, 10   ;;  %s1711_s3 = sld [smem:[#allocation18_spill]] }
 0x3da   : > { %s1712_s12 = sld [smem:[#allocation19_spill]]  ;;  %s1713_s23 = smov %s1187_s24 }
 0x3db   : > { %s1714_s24 = smov %s1191_s25  ;;  %s1715_s25 = smov %s1419_s2 }
 0x3dc   : > { %s1716_s26 = smov %s1199_s27  ;;  %s1717_s27 = smov %s1203_s28 }
 0x3dd   : > { %s1718_s28 = smov %s1487_s20  ;;  %s1719_s29 = smov %s1211_s4 }
 0x3de   : > { %s1720_s4 = smov %s1215_s30  ;;  %s1721_s30 = smov %s1710_s15 }
 0x3df   : > { %s1722_s7 = smov %s1227_s9  ;;  %s1723_s8 = smov %s1231_s10 }
 0x3e0   : > { %s1724_s9 = smov %s1711_s3  ;;  %s1725_s10 = smov %s1712_s12 }
 0x3e1   :  { %26 = sbr.rel (!%p1602_p3) target bundleno = 19 (0x13), region = 125 }
 0x3e8   :  { %695 = vsyncpa [#allocation7], 1 }
 0x3e9   :  { %697 = vsyncpa [#allocation7 + $0x1], 1 }
 0x3ea   :  { %698 = vsyncpa [#allocation10], 1 }
 0x3eb   :  { %700 = vsyncpa [#allocation10 + $0x1], 1 }
 0x3ec   :  { %701 = vsyncpa [#allocation8], 1 }
 0x3ed   :  { %703 = vsyncpa [#allocation8 + $0x1], 1 }

</bundles_post_ra>
